<compile_context>
chip_gen: v6e
topology: v6e:2x2x1
jax: 0.10.0
libtpu: 0.0.40
codegen_flags: <defaults>
</compile_context>

<pallas_src>
import jax
import jax.numpy as jnp
from jax.experimental import pallas as pl
from jax.experimental.pallas import tpu as pltpu


# ----------------------------------------------------------------------------- #
# TextEmbeddingEncoder: masked mean pooling + L2 normalize + nn.Linear projection
# ----------------------------------------------------------------------------- #
def text_embed_kernel(tok_ref, mask_ref, w_ref, b_ref, out_ref):
    # tok_ref : (TB, S, E)   bf16  token embeddings (transformer backbone output)
    # mask_ref: (TB, S, 1)   f32   attention mask (1.0 = real token, 0.0 = padding)
    # w_ref   : (E, O_pad)   f32   projection weight, pre-transposed + zero-padded to 128 lanes
    # b_ref   : (1, O_pad)   f32   projection bias, zero-padded
    # out_ref : (TB, O_pad)  f32   lane-dense output (sliced to O outside the kernel)
    tok = tok_ref[...].astype(jnp.float32)            # cast after DMA; f32 VPU math (v5e-safe)

    # masked sum over the sequence axis; (TB,S,1) mask broadcasts over E as a lane splat
    summed = jnp.sum(tok * mask_ref[...], axis=1)     # (TB, E)

    # mean-pool denominator cancels under L2 normalization: normalize(sum/len) == normalize(sum)
    sq = jnp.sum(summed * summed, axis=-1, keepdims=True)          # (TB, 1)
    inv_norm = jax.lax.rsqrt(jnp.maximum(sq, 1e-12))

    # project first on the MXU, then apply the cheap per-row scale on the (TB, O_pad) result
    y = jnp.dot(summed, w_ref[...], preferred_element_type=jnp.float32)   # (TB, O_pad)
    out_ref[...] = (y * inv_norm + b_ref[...]).astype(out_ref.dtype)


def _encode_tokens_padded(token_embeddings, attention_mask, proj_weight, proj_bias, block_b):
    """Returns padded embeddings of shape (B_pad, O_pad); padded lanes/rows are exact zeros/bias."""
    B, S, E = token_embeddings.shape
    O = proj_weight.shape[0]
    O_pad = max(128, pl.cdiv(O, 128) * 128)           # lane-dense output (unmasked stores)
    B_pad = pl.cdiv(B, block_b) * block_b

    # dominant HBM read in bf16; batch padded to a multiple of the tile
    tok = jnp.pad(token_embeddings.astype(jnp.bfloat16),
                  ((0, B_pad - B), (0, 0), (0, 0)))
    mask = jnp.pad(attention_mask.astype(jnp.float32).reshape(B, S, 1),
                   ((0, B_pad - B), (0, 0), (0, 0)))

    w_t = jnp.pad(proj_weight.T.astype(jnp.float32), ((0, 0), (0, O_pad - O)))   # (E, O_pad)
    b2 = jnp.pad(proj_bias.astype(jnp.float32).reshape(1, O), ((0, 0), (0, O_pad - O)))

    grid = (B_pad // block_b,)
    return pl.pallas_call(
        text_embed_kernel,
        out_shape=jax.ShapeDtypeStruct((B_pad, O_pad), jnp.float32),
        grid_spec=pltpu.PrefetchScalarGridSpec(
            num_scalar_prefetch=0,
            grid=grid,
            in_specs=[
                pl.BlockSpec((block_b, S, E), lambda i: (i, 0, 0)),   # tiled over batch
                pl.BlockSpec((block_b, S, 1), lambda i: (i, 0, 0)),
                pl.BlockSpec((E, O_pad), lambda i: (0, 0)),           # resident across the grid
                pl.BlockSpec((1, O_pad), lambda i: (0, 0)),
            ],
            out_specs=pl.BlockSpec((block_b, O_pad), lambda i: (i, 0)),
        ),
        compiler_params=pltpu.CompilerParams(
            # batch tiles are independent -> megacore sharding on v7x, harmless on v5e/v6e
            dimension_semantics=("parallel",),
        ),
    )(tok, mask, w_t, b2)


def text_embedding_encoder(token_embeddings, attention_mask, proj_weight, proj_bias, *, block_b=8):
    """TextEmbeddingEncoder.forward on pre-tokenized embeddings -> (B, O) sentence embeddings."""
    B = token_embeddings.shape[0]
    O = proj_weight.shape[0]
    emb = _encode_tokens_padded(token_embeddings, attention_mask, proj_weight, proj_bias, block_b)
    return emb[:B, :O]


# ----------------------------------------------------------------------------- #
# HybridTextGNNModel: text dot-product score + sigmoids + weighted blend with GNN
# ----------------------------------------------------------------------------- #
def _sigmoid(x):
    return 1.0 / (1.0 + jnp.exp(-x))


def _make_combine_kernel(text_weight):
    tw = float(text_weight)

    def hybrid_combine_kernel(u_ref, i_ref, g_ref, out_ref):
        # u_ref/i_ref: (TB, O_pad) f32 padded embeddings (padded lanes are exact zeros)
        # g_ref      : (TB, 1)     f32 raw GNN scores
        text = jnp.sum(u_ref[...] * i_ref[...], axis=-1, keepdims=True)   # (TB, 1)
        out_ref[...] = (tw * _sigmoid(text) + (1.0 - tw) * _sigmoid(g_ref[...])).astype(out_ref.dtype)

    return hybrid_combine_kernel


def hybrid_text_gnn_forward(gnn_scores, user_tok, user_mask, item_tok, item_mask,
                            proj_weight, proj_bias, text_weight=0.5, *, block_b=8):
    """HybridTextGNNModel.forward (text encoding + score combination) -> (B,) combined scores."""
    B = gnn_scores.shape[0]

    u_emb = _encode_tokens_padded(user_tok, user_mask, proj_weight, proj_bias, block_b)  # (B_pad, O_pad)
    i_emb = _encode_tokens_padded(item_tok, item_mask, proj_weight, proj_bias, block_b)
    B_pad, O_pad = u_emb.shape

    g = jnp.pad(gnn_scores.astype(jnp.float32).reshape(B, 1), ((0, B_pad - B), (0, 0)))

    combined = pl.pallas_call(
        _make_combine_kernel(text_weight),
        out_shape=jax.ShapeDtypeStruct((B_pad, 1), jnp.float32),
        grid_spec=pltpu.PrefetchScalarGridSpec(
            num_scalar_prefetch=0,
            grid=(B_pad // block_b,),
            in_specs=[
                pl.BlockSpec((block_b, O_pad), lambda i: (i, 0)),
                pl.BlockSpec((block_b, O_pad), lambda i: (i, 0)),
                pl.BlockSpec((block_b, 1), lambda i: (i, 0)),
            ],
            out_specs=pl.BlockSpec((block_b, 1), lambda i: (i, 0)),
        ),
        compiler_params=pltpu.CompilerParams(dimension_semantics=("parallel",)),
    )(u_emb, i_emb, g)
    return combined[:B, 0]


# ----------------------------------------------------------------------------- #
# Pure-JAX reference (mirrors the PyTorch math; tokens cast to bf16 like the kernel DMA)
# ----------------------------------------------------------------------------- #
def _reference_encode(tok, mask, W, b):
    tok = tok.astype(jnp.bfloat16).astype(jnp.float32)
    m = mask[:, :, None]
    summed = jnp.sum(tok * m, axis=1)
    denom = jnp.maximum(jnp.sum(m, axis=1), 1e-9)
    pooled = summed / denom
    normed = pooled / jnp.sqrt(jnp.maximum(jnp.sum(pooled * pooled, -1, keepdims=True), 1e-12))
    return jnp.dot(normed, W.T, precision=jax.lax.Precision.HIGHEST) + b


def _reference_hybrid(gnn_scores, u_tok, u_mask, i_tok, i_mask, W, b, tw):
    u = _reference_encode(u_tok, u_mask, W, b)
    v = _reference_encode(i_tok, i_mask, W, b)
    text = jnp.sum(u * v, axis=1)
    return tw * _sigmoid(text) + (1.0 - tw) * _sigmoid(gnn_scores)


if __name__ == "__main__":
    # B = edges to score, S = seq length (<= max_seq_length), E = MiniLM hidden, O = projection dim
    B, S, E, O = 32, 16, 128, 64
    TB = 8   # batch tile; raise toward 128/256 for production batches (budget VMEM for v7x's 64 MiB)
    text_weight = 0.5

    key = jax.random.PRNGKey(0)
    ks = jax.random.split(key, 7)

    user_tok = jax.random.normal(ks[0], (B, S, E), dtype=jnp.float32)
    item_tok = jax.random.normal(ks[1], (B, S, E), dtype=jnp.float32)

    len_u = jax.random.randint(ks[2], (B,), 1, S + 1)
    len_i = jax.random.randint(ks[3], (B,), 1, S + 1)
    user_mask = (jnp.arange(S)[None, :] < len_u[:, None]).astype(jnp.float32)
    item_mask = (jnp.arange(S)[None, :] < len_i[:, None]).astype(jnp.float32)

    proj_weight = jax.random.normal(ks[4], (O, E), dtype=jnp.float32) * (1.0 / jnp.sqrt(E))
    proj_bias = jax.random.normal(ks[5], (O,), dtype=jnp.float32) * 0.01
    gnn_scores = jax.random.normal(ks[6], (B,), dtype=jnp.float32)

    # TextEmbeddingEncoder path
    u_emb = text_embedding_encoder(user_tok, user_mask, proj_weight, proj_bias, block_b=TB)
    u_emb = jax.block_until_ready(u_emb)
    ref_u = _reference_encode(user_tok, user_mask, proj_weight, proj_bias)
    assert u_emb.shape == (B, O)
    assert jnp.allclose(u_emb, ref_u, atol=2e-3, rtol=2e-3), "encoder mismatch vs reference"

    # Full HybridTextGNNModel forward
    scores = hybrid_text_gnn_forward(gnn_scores, user_tok, user_mask, item_tok, item_mask,
                                     proj_weight, proj_bias, text_weight, block_b=TB)
    scores = jax.block_until_ready(scores)
    ref_scores = _reference_hybrid(gnn_scores, user_tok, user_mask, item_tok, item_mask,
                                   proj_weight, proj_bias, text_weight)
    assert scores.shape == (B,)
    assert jnp.allclose(scores, ref_scores, atol=2e-3, rtol=2e-3), "hybrid mismatch vs reference"

    print("KERNEL_OK")
</pallas_src>

<mosaic_0001>
module attributes {stable_mosaic.version = 11 : i64} {
  func.func @text_embed_kernel(%arg0: i32, %arg1: memref<8x16x128xbf16, #tpu.memory_space<vmem>>, %arg2: memref<8x16x1xf32, #tpu.memory_space<vmem>>, %arg3: memref<128x128xf32, #tpu.memory_space<vmem>>, %arg4: memref<1x128xf32, #tpu.memory_space<vmem>>, %arg5: memref<8x128xf32, #tpu.memory_space<vmem>>) attributes {dimension_semantics = [#tpu.dimension_semantics<parallel>], iteration_bounds = array<i64: 4>, scalar_prefetch = 0 : i64, scratch_operands = 0 : i64, tpu.core_type = #tpu.core_type<tc>, window_params = [{transform_indices = @transform_0, window_bounds = array<i64: 8, 16, 128>}, {transform_indices = @transform_1, window_bounds = array<i64: 8, 16, 1>}, {pipeline_mode = #tpu.pipeline_mode<synchronous>, transform_indices = @transform_2, window_bounds = array<i64: 128, 128>}, {pipeline_mode = #tpu.pipeline_mode<synchronous>, transform_indices = @transform_3, window_bounds = array<i64: 1, 128>}, {transform_indices = @transform_4, window_bounds = array<i64: 8, 128>}]} {
    %c0 = arith.constant 0 : index
    %c0_0 = arith.constant 0 : index
    %c0_1 = arith.constant 0 : index
    %0 = vector.load %arg1[%c0, %c0_0, %c0_1] : memref<8x16x128xbf16, #tpu.memory_space<vmem>>, vector<8x16x128xbf16>
    %1 = arith.extf %0 : vector<8x16x128xbf16> to vector<8x16x128xf32>
    %c0_2 = arith.constant 0 : index
    %c0_3 = arith.constant 0 : index
    %c0_4 = arith.constant 0 : index
    %2 = vector.load %arg2[%c0_2, %c0_3, %c0_4] : memref<8x16x1xf32, #tpu.memory_space<vmem>>, vector<8x16x1xf32>
    %3 = vector.broadcast %2 : vector<8x16x1xf32> to vector<8x16x128xf32>
    %4 = arith.mulf %1, %3 : vector<8x16x128xf32>
    %cst = arith.constant dense<0.000000e+00> : vector<8x128xf32>
    %5 = vector.multi_reduction <add>, %4, %cst [1] : vector<8x16x128xf32> to vector<8x128xf32>
    %6 = arith.mulf %5, %5 : vector<8x128xf32>
    %cst_5 = arith.constant dense<0.000000e+00> : vector<8xf32>
    %7 = vector.multi_reduction <add>, %6, %cst_5 [1] : vector<8x128xf32> to vector<8xf32>
    %8 = vector.shape_cast %7 : vector<8xf32> to vector<8x1xf32>
    %cst_6 = arith.constant 9.99999996E-13 : f32
    %9 = vector.broadcast %cst_6 : f32 to vector<8x1xf32>
    %10 = arith.maximumf %8, %9 : vector<8x1xf32>
    %11 = math.rsqrt %10 : vector<8x1xf32>
    %c0_7 = arith.constant 0 : index
    %c0_8 = arith.constant 0 : index
    %12 = vector.load %arg3[%c0_7, %c0_8] : memref<128x128xf32, #tpu.memory_space<vmem>>, vector<128x128xf32>
    %cst_9 = arith.constant dense<0.000000e+00> : vector<8x128xf32>
    %13 = tpu.matmul %5, %12, %cst_9 {dimension_numbers = #tpu.dot_dimension_numbers<[1], [0], [0], [1], [0, 0, 1, 1], [], []>} : vector<8x128xf32>, vector<128x128xf32>, vector<8x128xf32> -> vector<8x128xf32>
    %14 = vector.broadcast %11 : vector<8x1xf32> to vector<8x128xf32>
    %15 = arith.mulf %13, %14 : vector<8x128xf32>
    %c0_10 = arith.constant 0 : index
    %c0_11 = arith.constant 0 : index
    %16 = vector.load %arg4[%c0_10, %c0_11] : memref<1x128xf32, #tpu.memory_space<vmem>>, vector<1x128xf32>
    %17 = vector.broadcast %16 : vector<1x128xf32> to vector<8x128xf32>
    %18 = arith.addf %15, %17 : vector<8x128xf32>
    %c0_12 = arith.constant 0 : index
    %c0_13 = arith.constant 0 : index
    %19 = vector.load %arg5[%c0_12, %c0_13] : memref<8x128xf32, #tpu.memory_space<vmem>>, vector<8x128xf32>
    tpu.vector_store %arg5[%c0_12, %c0_13], %18 {strides = array<i32>} : memref<8x128xf32, #tpu.memory_space<vmem>>, vector<8x128xf32>,
    return
  }
  func.func @transform_0(%arg0: i32) -> (i32, i32, i32) {
    %c0_i32 = arith.constant 0 : i32
    %c0_i32_0 = arith.constant 0 : i32
    %c0_i32_1 = arith.constant 0 : i32
    return %arg0, %c0_i32, %c0_i32_0 : i32, i32, i32
  }
  func.func @transform_1(%arg0: i32) -> (i32, i32, i32) {
    %c0_i32 = arith.constant 0 : i32
    %c0_i32_0 = arith.constant 0 : i32
    %c0_i32_1 = arith.constant 0 : i32
    return %arg0, %c0_i32, %c0_i32_0 : i32, i32, i32
  }
  func.func @transform_2(%arg0: i32) -> (i32, i32) {
    %c0_i32 = arith.constant 0 : i32
    %c0_i32_0 = arith.constant 0 : i32
    %c0_i32_1 = arith.constant 0 : i32
    return %c0_i32, %c0_i32_0 : i32, i32
  }
  func.func @transform_3(%arg0: i32) -> (i32, i32) {
    %c0_i32 = arith.constant 0 : i32
    %c0_i32_0 = arith.constant 0 : i32
    %c0_i32_1 = arith.constant 0 : i32
    return %c0_i32, %c0_i32_0 : i32, i32
  }
  func.func @transform_4(%arg0: i32) -> (i32, i32) {
    %c0_i32 = arith.constant 0 : i32
    %c0_i32_0 = arith.constant 0 : i32
    return %arg0, %c0_i32 : i32, i32
  }
}

</mosaic_0001>

<bundles_post_ra>
// kernel: tpu_custom_call.1
= control target key start
LH: loop header
LB: loop body
LE: loop exit
PB: predicated region body
PF: predicated region fallthrough
CT: control target
= control target key end

     0   :  { %9 = vsyncpa [#allocation3], 0  ;;  %s1105_s0 = inlined_call_operand.vmem [shape: bf16[32,16,128], index: 0, kind: input, shape index: {}]   ;;  %s1106_s1 = inlined_call_operand.vmem [shape: f32[32,16,1], index: 1, kind: input, shape index: {}]   ;;  %s1107_s2 = inlined_call_operand.vmem [shape: f32[128,128], index: 2, kind: input, shape index: {}]   ;;  %s1108_s3 = inlined_call_operand.vmem [shape: f32[1,128], index: 3, kind: input, shape index: {}]   ;;  %s1109_s4 = inlined_call_operand.hbm [shape: f32[32,128], index: 4, kind: output, shape index: {}]  }
   0x1   :  { %11 = vsyncpa [#allocation3 + $0x1], 0  ;;  %s904_s15 = smov 0   ;;  %s906_s16 = smov 0  }
   0x2   :  { %s908_s17 = smov 0   ;;  %s910_s18 = smov 0  }
   0x3 LB: > { %s925_s19 = sadd.s32 4294967295, %s873_s18   ;;  %s658_s20 = sadd.s32 4294967294, %s873_s18   ;;  %s873_s18 = sphi %s910_s18, %s1115_s18   ;;  %s869_s17 = sphi %s908_s17, %s1114_s17   ;;  %s865_s16 = sphi %s906_s16, %s1113_s16   ;;  %s861_s15 = sphi %s904_s15, %s1112_s15  }
   0x4   : > { %s929_s21 = sadd.s32 1, %s873_s18   ;;  %s118_s22 = sadd.s32 1, %s869_s17 }
   0x5   : > { %s115_s23 = ssub.s32 %s873_s18, %s929_s21  ;;  %p128_p0 = scmp.ne.s32.totalorder %s869_s17, %s865_s16 }
   0x6   : > { %p116_p1 = scmp.eq.s32.totalorder %s115_s23, 0  ;;  %p129_p2 = scmp.eq.s32.totalorder %s925_s19, 3 }
   0x7   : > { %p134_p3 = scmp.ne.s32.totalorder %s865_s16, %s861_s15  ;;  %p135_p4 = scmp.eq.s32.totalorder %s658_s20, 3 }
   0x8   : > { %s940_s24 = scalar_select %p116_p1, %s869_s17, %s118_s22  }
   0x9   : > { %p942_p5 = por %p129_p2, %p128_p0  ;;  %p946_p6 = por %p135_p4, %p134_p3 }
   0xa   : > { %p661_p7 = scmp.ge.s32.totalorder %s873_s18, 1  ;;  %p179_p8 = scmp.lt.s32.totalorder %s873_s18, 5 }
   0xc   : > { %p180_p9 = pnand %p661_p7, %p179_p8 }
   0xd   : > { %s663_s27 = sshll.u32 (!%p180_p9), %s925_s19, 3  ;;  %s671_s13 = sshll.u32 (!%p180_p9), %s925_s19, 7 }
   0xe   : > { %183 = sbr.rel (%p180_p9) target bundleno = 402 (0x192), region = 36  ;;  %p213_p10 = scmp.lt.s32.totalorder (!%p180_p9), %s663_s27, 31 }
   0xf   : > { %s878_s6 = smov (!%p180_p9), [#allocation2]  }
  0x13   : > { %v875_v0 = vmov 0   ;;  %s1117_s27 = smov (!%p213_p10, %s663_s27), 31  ;;  %v876_v9 = vmov 0.0   ;;  %v476_v10 = vld [vmem:[%s1107_s2 + $0x78] sm:$0xff]  ;;  %v475_v11 = vld [vmem:[%s1107_s2 + $0x70] sm:$0xff]  ;;  %v474_v14 = vld [vmem:[%s1107_s2 + $0x68] sm:$0xff] }
  0x14   : > { %810 = vset.pattern.permute.xlu1 %v875_v0  ;;  %809 = vset.pattern.permute.xlu0 %v875_v0  ;;  %s675_s28 = sshll.u32 %s1117_s27, 4  ;;  %v473_v15 = vld [vmem:[%s1107_s2 + $0x60] sm:$0xff]  ;;  %v472_v18 = vld [vmem:[%s1107_s2 + $0x58] sm:$0xff]  ;;  %v471_v21 = vld [vmem:[%s1107_s2 + $0x50] sm:$0xff]  ;;  %vm877_vm0 = vmmov 0   ;;  %s674_s7 = sshll.u32 %s1117_s27, 3 }
  0x15   : > { %s959_s5 = scalar_lea.vmem %s1106_s1, %s675_s28  ;;  %732 = vmatprep.subr.mxu0 %v876_v9  ;;  %v470_v22 = vld [vmem:[%s1107_s2 + $0x48] sm:$0xff]  ;;  %v469_v25 = vld [vmem:[%s1107_s2 + $0x40] sm:$0xff]  ;;  %v468_v26 = vld [vmem:[%s1107_s2 + $0x38] sm:$0xff]  ;;  %764 = vmatprep.mubr.msk.f32.mxu0 %vm877_vm0, %v876_v9  ;;  %s1046_s9 = scalar_lea.vmem %s1105_s0, %s674_s7  ;;  %vm442_vm1 = vcmask 1041409   ;;  %vm444_vm2 = vcmask 1042434   ;;  %vm446_vm3 = vcmask 1043459  }
  0x16   : > { %v260_v1 = vld [vmem:[%s959_s5 + $0x10] sm:$0xff]  ;;  %v258_v2 = vld [vmem:[%s959_s5] sm:$0xff]  ;;  %v261_v3 = vld [vmem:[%s959_s5 + $0x18] sm:$0xff]  ;;  %733 = vmatpush3.msra.mxu0 %v476_v10  ;;  %vm448_vm4 = vcmask 1044484   ;;  %vm450_vm5 = vcmask 1045509   ;;  %vm452_vm6 = vcmask 1046534   ;;  %s585_s28 = scalar_lea.hbm %s1109_s4, %s671_s13 }
  0x17   : > { %286 = vperm.xlu1 %810, %v260_v1   ;;  %276 = vperm.xlu0 %809, %v258_v2   ;;  %v259_v4 = vld [vmem:[%s959_s5 + $0x8] sm:$0xff]  ;;  %v262_v6 = vld [vmem:[%s959_s5 + $0x20] sm:$0xff]  ;;  %v265_v7 = vld [vmem:[%s959_s5 + $0x38] sm:$0xff]  ;;  %vm454_vm7 = vcmask 1047559   ;;  %s209_s27 = sand.u32 1, %s865_s16   ;;  %s817_s7 = sshll.u32 %s878_s6, 4  ;;  %s818_s7 = int_to_ptr.vmem [resolvable:$false] %s817_s7 }
  0x18   : > { %v263_v5 = vld [vmem:[%s959_s5 + $0x28] sm:$0xff]  ;;  %v264_v8 = vld [vmem:[%s959_s5 + $0x30] sm:$0xff]  ;;  %v266_v13 = vld [vmem:[%s959_s5 + $0x40] sm:$0xff]  ;;  %734 = vmatprep.subr.mxu0 %v876_v9  ;;  %s662_s10 = sshll.u32 %s209_s27, 3  ;;  %s574_s29 = scalar_lea.sflag [#allocation3], %s209_s27 }
  0x19   : > { %v267_v12 = vld [vmem:[%s959_s5 + $0x48] sm:$0xff]  ;;  %735 = vmatpush3.msra.mxu0 %v475_v11  ;;  %v269_v16 = vld [vmem:[%s959_s5 + $0x58] sm:$0xff]  ;;  %v268_v17 = vld [vmem:[%s959_s5 + $0x50] sm:$0xff]  ;;  %s211_s14 = scalar_lea.vmem [#allocation2], %s662_s10  ;;  %s819_s19 = scalar_lea.vmem %s818_s7, 256 }
  0x1a   : > { %736 = vmatprep.subr.mxu0 %v876_v9  ;;  %v271_v19 = vld [vmem:[%s959_s5 + $0x68] sm:$0xff]  ;;  %v270_v20 = vld [vmem:[%s959_s5 + $0x60] sm:$0xff]  ;;  %v273_v23 = vld [vmem:[%s959_s5 + $0x78] sm:$0xff]  ;;  %s587_s20 = sshll.u32 %s211_s14, 4  ;;  %s588_s20 = int_to_ptr.vmem [resolvable:$true] %s587_s20 }
  0x1b   : > { %291 = vperm.xlu1 %810, %v261_v3   ;;  %281 = vperm.xlu0 %809, %v259_v4   ;;  %v272_v24 = vld [vmem:[%s959_s5 + $0x70] sm:$0xff]  ;;  %v466_v28 = vld [vmem:[%s1107_s2 + $0x28] sm:$0xff]  ;;  %v465_v29 = vld [vmem:[%s1107_s2 + $0x20] sm:$0xff]  ;;  %s813_s30 = scalar_lea.vmem %s588_s20, 128  ;;  %p820_p0 = scmp.lt.s32.totalorder %s588_s20, %s818_s7 }
  0x1c   : > { %737 = vmatpush3.msra.mxu0 %v474_v14  ;;  %v467_v27 = vld [vmem:[%s1107_s2 + $0x30] sm:$0xff]  ;;  %v464_v30 = vld [vmem:[%s1107_s2 + $0x18] sm:$0xff]  ;;  %v462_v32 = vld [vmem:[%s1107_s2 + $0x8] sm:$0xff]  ;;  %p814_p11 = scmp.ne.s32.totalorder %s588_s20, %s813_s30  ;;  %p821_p1 = scmp.lt.s32.totalorder %s819_s19, %s813_s30 }
  0x1d   : > { %738 = vmatprep.subr.mxu0 %v876_v9  ;;  %v463_v31 = vld [vmem:[%s1107_s2 + $0x10] sm:$0xff]  ;;  %v461_v33 = vld [vmem:[%s1107_s2] sm:$0xff]  ;;  %v708_v34 = vld [vmem:[%s1046_s9 + $0x8] sm:$0xff]  }
  0x1e   : > { %739 = vmatpush3.msra.mxu0 %v473_v15  ;;  %v677_v37 = vld [vmem:[%s1046_s9] sm:$0xff]   ;;  %v683_v38 = vunpack.c.h.bf16 %v708_v34  ;;  %v682_v40 = vunpack.c.l.bf16 %v708_v34  ;;  %v709_v41 = vld [vmem:[%s1046_s9 + $0x10] sm:$0xff]   ;;  %v710_v50 = vld [vmem:[%s1046_s9 + $0x18] sm:$0xff]   ;;  %p815_p12 = pnand %p814_p11, %p942_p5  ;;  %p822_p2 = por %p821_p1, %p820_p0 }
  0x1f   : > { %301 = vperm.xlu1 %810, %v263_v5   ;;  %296 = vperm.xlu0 %809, %v262_v6   ;;  %v679_v39 = vunpack.c.h.bf16 %v677_v37  ;;  %v678_v42 = vunpack.c.l.bf16 %v677_v37  ;;  %v687_v47 = vunpack.c.h.bf16 %v709_v41  ;;  %v686_v48 = vunpack.c.l.bf16 %v709_v41  ;;  %v711_v60 = vld [vmem:[%s1046_s9 + $0x20] sm:$0xff]  }
  0x20   : > { %740 = vmatprep.subr.mxu0 %v876_v9  ;;  %v691_v58 = vunpack.c.h.bf16 %v710_v50  ;;  %v690_v59 = vunpack.c.l.bf16 %v710_v50  ;;  %v695_v3 = vunpack.c.h.bf16 %v711_v60  ;;  %v694_v6 = vunpack.c.l.bf16 %v711_v60  ;;  %p816_p13 = pneg %p815_p12 }
  0x21   : > { %741 = vmatpush3.msra.mxu0 %v472_v18 }
  0x22   : > { %742 = vmatprep.subr.mxu0 %v876_v9  ;;  %p823_p3 = pnand %p822_p2, %p816_p13 }
  0x23   : > { %311 = vperm.xlu1 %810, %v265_v7   ;;  %306 = vperm.xlu0 %809, %v264_v8   ;;  %v712_v7 = vld [vmem:[%s1046_s9 + $0x28] sm:$0xff]  }
  0x24   : > { %743 = vmatpush3.msra.mxu0 %v471_v21  ;;  %v699_v14 = vunpack.c.h.bf16 %v712_v7  ;;  %v698_v18 = vunpack.c.l.bf16 %v712_v7 }
  0x25   : > { %744 = vmatprep.subr.mxu0 %v876_v9 }
  0x26   : > { %745 = vmatpush3.msra.mxu0 %v470_v22 }
  0x27   : > { %321 = vperm.xlu1 %810, %v267_v12   ;;  %316 = vperm.xlu0 %809, %v266_v13  }
  0x28   : > { %746 = vmatprep.subr.mxu0 %v876_v9 }
  0x29   : > { %747 = vmatpush3.msra.mxu0 %v469_v25 }
  0x2a   : > { %748 = vmatprep.subr.mxu0 %v876_v9 }
  0x2b   : > { %331 = vperm.xlu1 %810, %v269_v16   ;;  %326 = vperm.xlu0 %809, %v268_v17  }
  0x2c   : > { %749 = vmatpush3.msra.mxu0 %v468_v26 }
  0x2d   : > { %750 = vmatprep.subr.mxu0 %v876_v9 }
  0x2e   : > { %751 = vmatpush3.msra.mxu0 %v467_v27 }
  0x2f   : > { %341 = vperm.xlu1 %810, %v271_v19   ;;  %336 = vperm.xlu0 %809, %v270_v20   ;;  %v713_v19 = vld [vmem:[%s1046_s9 + $0x30] sm:$0xff]  }
  0x30   : > { %752 = vmatprep.subr.mxu0 %v876_v9  ;;  %v703_v26 = vunpack.c.h.bf16 %v713_v19  ;;  %v702_v27 = vunpack.c.l.bf16 %v713_v19 }
  0x31   : > { %753 = vmatpush3.msra.mxu0 %v466_v28  ;;  %v714_v28 = vld [vmem:[%s1046_s9 + $0x38] sm:$0xff]  }
  0x32   : > { %754 = vmatprep.subr.mxu0 %v876_v9 }
  0x33   : > { %351 = vperm.xlu1 %810, %v273_v23   ;;  %346 = vperm.xlu0 %809, %v272_v24  }
  0x34   : > { %755 = vmatpush3.msra.mxu0 %v465_v29 }
  0x35   : > { %756 = vmatprep.subr.mxu0 %v876_v9 }
  0x36   : > { %757 = vmatpush3.msra.mxu0 %v464_v30 }
  0x37   : > { %758 = vmatprep.subr.mxu0 %v876_v9 }
  0x38   : > { %759 = vmatpush3.msra.mxu0 %v463_v31 }
  0x39   : > { %760 = vmatprep.subr.mxu0 %v876_v9 }
  0x3a   : > { %761 = vmatpush3.msra.mxu0 %v462_v32 }
  0x3b   : > { %762 = vmatprep.subr.mxu0 %v876_v9 }
  0x3c   : > { %763 = vmatpush3.msra.mxu0 %v461_v33 }
  0x92   : > { %v287_v35 = vpop.permute.xlu1 %286  ;;  %v277_v36 = vpop.permute.xlu0 %276 }
  0x93   : > { %v356_v49 = vmul.f32 %v682_v40, %v287_v35  ;;  %v354_v51 = vmul.f32 %v678_v42, %v277_v36 }
  0x96   : > { %v292_v43 = vpop.permute.xlu1 %291  ;;  %v282_v44 = vpop.permute.xlu0 %281 }
  0x97   : > { %v357_v45 = vmul.f32 %v683_v38, %v292_v43  ;;  %v355_v46 = vmul.f32 %v679_v39, %v282_v44  ;;  %v707_v39 = vunpack.c.h.bf16 %v714_v28  ;;  %v706_v43 = vunpack.c.l.bf16 %v714_v28 }
  0x99   : > { %v377_v52 = vadd.f32 %v357_v45, %v356_v49  ;;  %v370_v55 = vadd.f32 %v355_v46, %v354_v51 }
  0x9a   : > { %v302_v53 = vpop.permute.xlu1 %301  ;;  %v297_v54 = vpop.permute.xlu0 %296 }
  0x9b   : > { %v359_v56 = vmul.f32 %v687_v47, %v302_v53  ;;  %v358_v57 = vmul.f32 %v686_v48, %v297_v54  ;;  %v378_v62 = vrot.slane %v377_v52, 4  ;;  %v371_v1 = vrot.slane %v370_v55, 4 }
  0x9d   : > { %v384_v61 = vadd.f32 %v359_v56, %v358_v57  ;;  %v379_v8 = vadd.f32 %v378_v62, %v377_v52  ;;  %v372_v12 = vadd.f32 %v371_v1, %v370_v55 }
  0x9e   : > { %v312_v63 = vpop.permute.xlu1 %311  ;;  %v307_v0 = vpop.permute.xlu0 %306 }
  0x9f   : > { %v361_v2 = vmul.f32 %v691_v58, %v312_v63  ;;  %v385_v4 = vrot.slane %v384_v61, 4  ;;  %v360_v5 = vmul.f32 %v690_v59, %v307_v0  ;;  %v380_v20 = vrot.slane %v379_v8, 2 }
  0xa0   : > { %v373_v25 = vrot.slane %v372_v12, 2 }
  0xa1   : > { %v391_v9 = vadd.f32 %v361_v2, %v360_v5  ;;  %v386_v15 = vadd.f32 %v385_v4, %v384_v61  ;;  %v381_v34 = vadd.f32 %v380_v20, %v379_v8 }
  0xa2   : > { %v322_v10 = vpop.permute.xlu1 %321  ;;  %v317_v11 = vpop.permute.xlu0 %316  ;;  %v374_v40 = vadd.f32 %v373_v25, %v372_v12 }
  0xa3   : > { %v363_v13 = vmul.f32 %v695_v3, %v322_v10  ;;  %v392_v16 = vrot.slane %v391_v9, 4  ;;  %v362_v17 = vmul.f32 %v694_v6, %v317_v11  ;;  %v387_v29 = vrot.slane %v386_v15, 2 }
  0xa4   : > { %v382_v49 = vrot.slane %v381_v34, 1  ;;  %v375_v54 = vrot.slane %v374_v40, 1 }
  0xa5   : > { %v393_v21 = vadd.f32 %v392_v16, %v391_v9  ;;  %v398_v22 = vadd.f32 %v363_v13, %v362_v17  ;;  %v388_v44 = vadd.f32 %v387_v29, %v386_v15 }
  0xa6   : > { %v332_v23 = vpop.permute.xlu1 %331  ;;  %v327_v24 = vpop.permute.xlu0 %326  ;;  %v383_v63 = vadd.f32 %v382_v49, %v381_v34  ;;  %v376_v2 = vadd.f32 %v375_v54, %v374_v40 }
  0xa7   : > { %v399_v30 = vrot.slane %v398_v22, 4  ;;  %v365_v31 = vmul.f32 %v699_v14, %v332_v23  ;;  %v364_v32 = vmul.f32 %v698_v18, %v327_v24  ;;  %v394_v33 = vrot.slane %v393_v21, 2 }
  0xa8   : > { %v389_v58 = vrot.slane %v388_v44, 1  ;;  %v427_v10 = vmul.f32 %v383_v63, %v383_v63  ;;  %v426_v12 = vmul.f32 %v376_v2, %v376_v2  ;;  %v485_v17 = vsel %vm442_vm1, %v383_v63, %v376_v2 }
  0xa9   : > { %v400_v35 = vadd.f32 %v399_v30, %v398_v22  ;;  %v405_v36 = vadd.f32 %v365_v31, %v364_v32  ;;  %v395_v47 = vadd.f32 %v394_v33, %v393_v21 }
  0xaa   : > { %v342_v37 = vpop.permute.xlu1 %341  ;;  %v337_v38 = vpop.permute.xlu0 %336  ;;  %v390_v5 = vadd.f32 %v389_v58, %v388_v44  ;;  %v669_v44 = vld [vmem:[%s1108_s3] ss:$0 sm:$0xff] }
  0xab   : > { %v367_v41 = vmul.f32 %v703_v26, %v342_v37  ;;  %v366_v42 = vmul.f32 %v702_v27, %v337_v38  ;;  %v401_v45 = vrot.slane %v400_v35, 2  ;;  %v406_v46 = vrot.slane %v405_v36, 4 }
  0xac   : > { %v396_v60 = vrot.slane %v395_v47, 1  ;;  %v428_v16 = vmul.f32 %v390_v5, %v390_v5  ;;  %v486_v22 = vsel %vm444_vm2, %v390_v5, %v485_v17  ;;  %v443_v26 = vsel %vm442_vm1, %v427_v10, %v426_v12 }
  0xad   : > { %v412_v48 = vadd.f32 %v367_v41, %v366_v42  ;;  %v402_v50 = vadd.f32 %v401_v45, %v400_v35  ;;  %v407_v51 = vadd.f32 %v406_v46, %v405_v36 }
  0xae   : > { %v352_v52 = vpop.permute.xlu1 %351  ;;  %v347_v53 = vpop.permute.xlu0 %346  ;;  %v397_v7 = vadd.f32 %v396_v60, %v395_v47  ;;  %v445_v29 = vsel %vm444_vm2, %v428_v16, %v443_v26 }
  0xaf   : > { %v413_v55 = vrot.slane %v412_v48, 4  ;;  %v369_v56 = vmul.f32 %v707_v39, %v352_v52  ;;  %v368_v57 = vmul.f32 %v706_v43, %v347_v53  ;;  %v408_v59 = vrot.slane %v407_v51, 2 }
  0xb0   : > { %v403_v0 = vrot.slane %v402_v50, 1  ;;  %v429_v18 = vmul.f32 %v397_v7, %v397_v7  ;;  %v487_v24 = vsel %vm446_vm3, %v397_v7, %v486_v22 }
  0xb1   : > { %v414_v61 = vadd.f32 %v413_v55, %v412_v48  ;;  %v419_v62 = vadd.f32 %v369_v56, %v368_v57  ;;  %v409_v1 = vadd.f32 %v408_v59, %v407_v51 }
  0xb2   : > { %v404_v11 = vadd.f32 %v403_v0, %v402_v50  ;;  %v447_v32 = vsel %vm446_vm3, %v429_v18, %v445_v29 }
  0xb3   : > { %v415_v3 = vrot.slane %v414_v61, 2  ;;  %v420_v4 = vrot.slane %v419_v62, 4  ;;  %v410_v6 = vrot.slane %v409_v1, 1 }
  0xb4   : > { %v430_v21 = vmul.f32 %v404_v11, %v404_v11  ;;  %v488_v27 = vsel %vm448_vm4, %v404_v11, %v487_v24 }
  0xb5   : > { %v416_v8 = vadd.f32 %v415_v3, %v414_v61  ;;  %v421_v9 = vadd.f32 %v420_v4, %v419_v62  ;;  %v411_v13 = vadd.f32 %v410_v6, %v409_v1 }
  0xb6   : > { %v449_v34 = vsel %vm448_vm4, %v430_v21, %v447_v32 }
  0xb7   : > { %v417_v14 = vrot.slane %v416_v8, 1  ;;  %v422_v15 = vrot.slane %v421_v9, 2  ;;  %v431_v25 = vmul.f32 %v411_v13, %v411_v13  ;;  %v489_v31 = vsel %vm450_vm5, %v411_v13, %v488_v27 }
  0xb9   : > { %v423_v19 = vadd.f32 %v422_v15, %v421_v9  ;;  %v418_v20 = vadd.f32 %v417_v14, %v416_v8  ;;  %v451_v37 = vsel %vm450_vm5, %v431_v25, %v449_v34 }
  0xbb   : > { %v424_v23 = vrot.slane %v423_v19, 1  ;;  %v432_v28 = vmul.f32 %v418_v20, %v418_v20  ;;  %v490_v33 = vsel %vm452_vm6, %v418_v20, %v489_v31 }
  0xbd   : > { %v425_v30 = vadd.f32 %v424_v23, %v423_v19  ;;  %v453_v38 = vsel %vm452_vm6, %v432_v28, %v451_v37 }
  0xbf   : > { %v491_v35 = vsel %vm454_vm7, %v425_v30, %v490_v33  ;;  %v433_v36 = vmul.f32 %v425_v30, %v425_v30 }
  0xc0   : > { %765 = vmatmul.mubr.f32.vlgmr.msra.gmra.mxu0 %v491_v35 }
  0xc1   : > { %v455_v39 = vsel %vm454_vm7, %v433_v36, %v453_v38 }
  0xc2   : > { %457 = vadd.xlane.f32.xlu0 %v455_v39 }
 0x14b   : > { %v458_v40 = vpop.xlane.xlu0 %457 }
 0x14c   : > { %v459_v41 = vmax.f32 %v458_v40, 1e-12 }
 0x14e   : > { %811 = vrsqrt.f32 %v459_v41 }
 0x15b   : > { %v812_v42 = vpop.eup %811 }
 0x180   : > { %v559_v43 = vpop.f32.mrf.mxu0 }
 0x181   : > { %v563_v45 = vmul.f32 %v812_v42, %v559_v43 }
 0x182   : > { %v766_v46 = vpop.f32.mrf.mxu0 }
 0x183   : > { %v571_v47 = vadd.f32 %v669_v44, %v563_v45 }
 0x185   : > { %572 = vst [vmem:[%s211_s14] sm:$0xff] %v571_v47 }
 0x186   : > { %826 = shalt.err (!%p823_p3)
}
 0x187   : > { %s827_s8 = scalar_lea.hbm %s585_s28, 128  ;;  %s831_s27 = scalar_lea.hbm %s1109_s4, 512 }
 0x188   : > { %p828_p4 = scmp.ne.s32.totalorder %s585_s28, %s827_s8  ;;  %p832_p9 = scmp.lt.s32.totalorder %s585_s28, %s1109_s4 }
 0x189   : > { %p833_p10 = scmp.lt.s32.totalorder %s831_s27, %s827_s8 }
 0x18a   : > { %p829_p7 = pnand %p828_p4, %p942_p5 }
 0x18b   : > { %p834_p11 = por %p833_p10, %p832_p9 }
 0x18c   : > { %p830_p8 = pneg %p829_p7 }
 0x18e   : > { %p835_p12 = pnand %p834_p11, %p830_p8 }
 0x190   : > { %838 = shalt.err (!%p835_p12)
}
 0x191   : > { %767 = dma.vmem_to_hbm [thread:$0]  (%p942_p5), %s588_s20, 128, %s585_s28, %s574_s29  }
 0x192 PF: > { %p773_p13 = scmp.ge.s32.totalorder %s873_s18, 2  ;;  %s599_s12 = sand.u32 1, %s861_s15  }
 0x193   : > { %s600_s13 = scalar_lea.sflag [#allocation3], %s599_s12 }
 0x194   : > { %p770_p0 = pnand %p773_p13, %p946_p6 }
 0x196   : > { %p771_p1 = pneg %p770_p0 }
 0x198   : > { %856 = dma.done.wait (%p771_p1), %s600_s13, 128  }
 0x199   : > { %858 = vsyncadd (%p771_p1), %s600_s13, 4294967168  ;;  %p14_p2 = scmp.ge.s32.totalorder %s929_s21, 6   ;;  %s1112_s15 = smov %s865_s16 }
 0x19a   : > { %s1113_s16 = smov %s869_s17  ;;  %s1114_s17 = smov %s940_s24 }
 0x19b   : > { %s1115_s18 = smov %s929_s21  ;;  %16 = sbr.rel (!%p14_p2) target bundleno = 3 (0x3), region = 74 }
 0x1a0   :  { %605 = vsyncpa [#allocation3], 1 }
 0x1a1   :  { %607 = vsyncpa [#allocation3 + $0x1], 1 }

</bundles_post_ra>
